<compile_context>
chip_gen: v7x
topology: tpu7x:2x2x1
jax: 0.10.0
libtpu: 0.0.40
codegen_flags: <defaults>
</compile_context>

<pallas_src>
import functools

import jax
import jax.numpy as jnp
from jax import lax
from jax.experimental import pallas as pl
from jax.experimental.pallas import tpu as pltpu


def _kv_proj_kernel(x1_ref, x2_ref, w1_ref, w2_ref, b1_ref, b2_ref,
                    kv1_ref, kv2_ref):
    """Fused 1x1-conv K/V projection of one [C, tk] tile of each stream."""
    f32 = jnp.float32
    kv1_ref[0] = (jnp.dot(w1_ref[...], x1_ref[0], preferred_element_type=f32)
                  + b1_ref[...]).astype(jnp.bfloat16)
    kv2_ref[0] = (jnp.dot(w2_ref[...], x2_ref[0], preferred_element_type=f32)
                  + b2_ref[...]).astype(jnp.bfloat16)


def _scm_attn_kernel(x1q_ref, x2q_ref, kv1_ref, kv2_ref,
                     wq1_ref, wq2_ref, bq1_ref, bq2_ref,
                     fu1_ref, fu2_ref, q1t_sc, q2t_sc,
                     *, cp, kv_resident):
    f32, bf16 = jnp.float32, jnp.bfloat16
    ki = pl.program_id(2)

    @pl.when(ki == 0)
    def _init():
        # Query projections are constant over the kv reduction: compute once
        # per (batch, q-block), cache transposed ([tq, Cp]) in bf16 scratch,
        # and zero the output tiles we are about to accumulate into.
        q1 = jnp.dot(wq1_ref[...], x1q_ref[0],
                     preferred_element_type=f32) + bq1_ref[...]
        q2 = jnp.dot(wq2_ref[...], x2q_ref[0],
                     preferred_element_type=f32) + bq2_ref[...]
        q1t_sc[...] = q1.T.astype(bf16)
        q2t_sc[...] = q2.T.astype(bf16)
        fu1_ref[...] = jnp.zeros_like(fu1_ref)
        fu2_ref[...] = jnp.zeros_like(fu2_ref)

    def kv_tile(kv_ref):
        # Resident: dynamic index on the leading (untiled) axis picks the ki
        # tile out of the per-batch resident K/V.  Streamed: the BlockSpec
        # already delivered exactly this tile.
        kv = kv_ref[ki] if kv_resident else kv_ref[0]      # [2*Cp, tk] bf16
        return kv[:cp], kv[cp:]

    def sigmoid(s):                 # sigmoid(x) == 0.5 * tanh(x/2) + 0.5
        return 0.5 * jnp.tanh(0.5 * s) + 0.5

    nt = (((1,), (1,)), ((), ()))   # contract the kv axis of both operands

    # One stream at a time (halves simultaneously-live temporaries).
    # Fu1[c, n] += sum_m sigmoid(Q1^T K2)[n, m] * V2[c, m]
    k2, v2 = kv_tile(kv2_ref)
    p12 = sigmoid(jnp.dot(q1t_sc[...], k2, preferred_element_type=f32))
    fu1_ref[0] += lax.dot_general(v2, p12.astype(bf16), nt,
                                  preferred_element_type=f32)

    # Fu2[c, n] += sum_m sigmoid(Q2^T K1)[n, m] * V1[c, m]
    k1, v1 = kv_tile(kv1_ref)
    p21 = sigmoid(jnp.dot(q2t_sc[...], k1, preferred_element_type=f32))
    fu2_ref[0] += lax.dot_general(v1, p21.astype(bf16), nt,
                                  preferred_element_type=f32)


def _pick_tile(n, preferred):
    for t in (preferred, 2048, 1024, 512, 256, 128):
        if t <= n and n % t == 0:
            return t
    return n  # full extent is always a legal block (equals the array dim)
    # TODO(synk): for N not a multiple of 128 this materializes a full [N, N]
    # map per step; pad N (with kv-column masking) for large irregular inputs.


def scm_forward(x1_nchw, x2_nchw, params, *, tq=256, tk=1024,
                kv_resident_budget_bytes=16 * 1024 * 1024):
    """x1_nchw, x2_nchw: [B, C, H, W] float32. Returns (y1, y2) in NCHW."""
    B, C, H, W = x1_nchw.shape
    N = H * W
    ci = params["wq1"].shape[0]                 # torch-style weight [Ci, C]
    cp = max(8, ((ci + 7) // 8) * 8)            # sublane-aligned channel pad
    f32, bf16 = jnp.float32, jnp.bfloat16

    def pad_w(w):   # [Ci, C] -> [Cp, C] bf16 (zero rows: exact padding)
        return jnp.pad(w, ((0, cp - ci), (0, 0))).astype(bf16)

    def pad_b(b):   # [Ci] -> [Cp, 1] f32
        return jnp.pad(b, (0, cp - ci)).reshape(cp, 1).astype(f32)

    wq1, wq2 = pad_w(params["wq1"]), pad_w(params["wq2"])
    bq1, bq2 = pad_b(params["bq1"]), pad_b(params["bq2"])
    wkv1 = jnp.concatenate([pad_w(params["wk1"]), pad_w(params["wv1"])], axis=0)
    wkv2 = jnp.concatenate([pad_w(params["wk2"]), pad_w(params["wv2"])], axis=0)
    bkv1 = jnp.concatenate([pad_b(params["bk1"]), pad_b(params["bv1"])], axis=0)
    bkv2 = jnp.concatenate([pad_b(params["bk2"]), pad_b(params["bv2"])], axis=0)

    # Channels-first bf16 view: free reshape, N = H*W on the 128-lane axis.
    x1 = x1_nchw.reshape(B, C, N).astype(bf16)
    x2 = x2_nchw.reshape(B, C, N).astype(bf16)

    tq = _pick_tile(N, tq)
    tk = _pick_tile(N, tk)
    nk = N // tk

    # ---- Stage 1: K/V projections, computed exactly once per position. ----
    kv_shape = jax.ShapeDtypeStruct((B * nk, 2 * cp, tk), bf16)
    kv1, kv2 = pl.pallas_call(
        _kv_proj_kernel,
        out_shape=(kv_shape, kv_shape),
        grid_spec=pltpu.PrefetchScalarGridSpec(
            num_scalar_prefetch=0,
            grid=(B, nk),
            in_specs=[pl.BlockSpec((1, C, tk), lambda b, n: (b, 0, n)),
                      pl.BlockSpec((1, C, tk), lambda b, n: (b, 0, n)),
                      pl.BlockSpec((2 * cp, C), lambda b, n: (0, 0)),
                      pl.BlockSpec((2 * cp, C), lambda b, n: (0, 0)),
                      pl.BlockSpec((2 * cp, 1), lambda b, n: (0, 0)),
                      pl.BlockSpec((2 * cp, 1), lambda b, n: (0, 0))],
            out_specs=(
                pl.BlockSpec((1, 2 * cp, tk), lambda b, n: (b * nk + n, 0, 0)),
                pl.BlockSpec((1, 2 * cp, tk), lambda b, n: (b * nk + n, 0, 0)))),
        compiler_params=pltpu.CompilerParams(
            dimension_semantics=("parallel", "parallel"),
            vmem_limit_bytes=32 * 1024 * 1024),
    )(x1, x2, wkv1, wkv2, bkv1, bkv2)

    # ---- Stage 2: cross-attention; kv blocks reduced into the outputs. ----
    # Keep a batch's full K/V VMEM-resident across the (qi, ki) sweep when the
    # (double-buffered, both-stream) footprint fits the budget; the budget is
    # conservative so tile/residency choices sized for v5e/v6e never exceed
    # v7x's 64 MiB physical VMEM.  Otherwise K/V tiles are streamed per ki.
    resident_bytes = 2 * 2 * (2 * cp) * N * 2
    kv_resident = resident_bytes <= kv_resident_budget_bytes

    if kv_resident:
        kv_spec = pl.BlockSpec((nk, 2 * cp, tk), lambda b, qi, ki: (b, 0, 0))
    else:
        kv_spec = pl.BlockSpec((1, 2 * cp, tk),
                               lambda b, qi, ki: (b * nk + ki, 0, 0))
        # TODO(synk): if streamed kv DMAs are latency-exposed at small tk, add
        # pipeline_mode=pl.Buffered(3) here (re-check the v7x VMEM budget).

    xq_spec = pl.BlockSpec((1, C, tq), lambda b, qi, ki: (b, 0, qi))
    wq_spec = pl.BlockSpec((cp, C), lambda b, qi, ki: (0, 0))
    bq_spec = pl.BlockSpec((cp, 1), lambda b, qi, ki: (0, 0))
    fu_spec = pl.BlockSpec((1, cp, tq), lambda b, qi, ki: (b, 0, qi))

    out_shape = jax.ShapeDtypeStruct((B, cp, N), f32)
    kernel = functools.partial(_scm_attn_kernel, cp=cp, kv_resident=kv_resident)

    fu1, fu2 = pl.pallas_call(
        kernel,
        out_shape=(out_shape, out_shape),
        grid_spec=pltpu.PrefetchScalarGridSpec(
            num_scalar_prefetch=0,
            grid=(B, N // tq, nk),
            in_specs=[xq_spec, xq_spec, kv_spec, kv_spec,
                      wq_spec, wq_spec, bq_spec, bq_spec],
            out_specs=(fu_spec, fu_spec),
            scratch_shapes=[pltpu.VMEM((tq, cp), bf16),
                            pltpu.VMEM((tq, cp), bf16)]),
        compiler_params=pltpu.CompilerParams(
            dimension_semantics=("parallel", "parallel", "arbitrary"),
            vmem_limit_bytes=48 * 1024 * 1024),
    )(x1, x2, kv1, kv2, wq1, wq2, bq1, bq2)

    # Slice off the channel padding; channel concat with x stays in XLA.
    fu1 = fu1[:, :ci, :].reshape(B, ci, H, W)
    fu2 = fu2[:, :ci, :].reshape(B, ci, H, W)
    y1 = jnp.concatenate([x1_nchw, fu1], axis=1)
    y2 = jnp.concatenate([x2_nchw, fu2], axis=1)
    return y1, y2


def scm_reference(x1_nchw, x2_nchw, params, *, matmul_dtype=jnp.float32):
    """Pure-JAX reference mirroring the PyTorch forward.

    matmul_dtype=bfloat16 reproduces the kernel's mixed precision (bf16 MXU
    operands, f32 accumulation, f32 sigmoid); float32 is the exact module.
    """
    B, C, H, W = x1_nchw.shape
    N = H * W
    f32 = jnp.float32
    c = lambda t: t.astype(matmul_dtype)

    def proj(x, w, b):  # x: [B, C, N], w: [Ci, C], b: [Ci] -> [B, Ci, N]
        return (jnp.einsum("ic,bcn->bin", c(w), c(x),
                           preferred_element_type=f32)
                + b.reshape(1, -1, 1))

    x1 = x1_nchw.reshape(B, C, N)
    x2 = x2_nchw.reshape(B, C, N)
    Q1 = proj(x1, params["wq1"], params["bq1"])
    K1 = proj(x1, params["wk1"], params["bk1"])
    V1 = proj(x1, params["wv1"], params["bv1"])
    Q2 = proj(x2, params["wq2"], params["bq2"])
    K2 = proj(x2, params["wk2"], params["bk2"])
    V2 = proj(x2, params["wv2"], params["bv2"])
    R12 = jax.nn.sigmoid(jnp.einsum("bin,bim->bnm", c(Q1), c(K2),
                                    preferred_element_type=f32))
    R21 = jax.nn.sigmoid(jnp.einsum("bin,bim->bnm", c(Q2), c(K1),
                                    preferred_element_type=f32))
    Fu1 = jnp.einsum("bnm,bim->bin", c(R12), c(V2), preferred_element_type=f32)
    Fu2 = jnp.einsum("bnm,bim->bin", c(R21), c(V1), preferred_element_type=f32)
    ci = Fu1.shape[1]
    Fu1 = Fu1.reshape(B, ci, H, W)
    Fu2 = Fu2.reshape(B, ci, H, W)
    y1 = jnp.concatenate([x1_nchw, Fu1], axis=1)
    y2 = jnp.concatenate([x2_nchw, Fu2], axis=1)
    return y1, y2


def init_params(key, in_channels, inter_channels=None):
    if inter_channels is None:
        inter_channels = in_channels // 2
        if inter_channels == 0:
            inter_channels = 1
    keys = jax.random.split(key, 12)
    scale = 1.0 / jnp.sqrt(in_channels)
    params = {}
    for i, n in enumerate(["q1", "k1", "v1", "q2", "k2", "v2"]):
        # torch Conv2d(1x1) layout: weight [C_out, C_in], bias [C_out]
        params["w" + n] = scale * jax.random.normal(
            keys[2 * i], (inter_channels, in_channels), jnp.float32)
        params["b" + n] = scale * jax.random.normal(
            keys[2 * i + 1], (inter_channels,), jnp.float32)
    return params, inter_channels


if __name__ == "__main__":
    key = jax.random.PRNGKey(0)
    k_x1, k_x2, k_p = jax.random.split(key, 3)

    B, C, H, W = 2, 4, 16, 16            # N = 256
    params, ci = init_params(k_p, C, inter_channels=None)   # Ci = 2 -> Cp = 8

    x1 = jax.random.normal(k_x1, (B, C, H, W), jnp.float32)
    x2 = jax.random.normal(k_x2, (B, C, H, W), jnp.float32)

    # References computed once.
    r1m, r2m = scm_reference(x1, x2, params, matmul_dtype=jnp.bfloat16)
    r1, r2 = scm_reference(x1, x2, params)

    # tq = tk = 128 -> grid (2, 2, 2): exercises init / kv accumulation /
    # finalize and multiple query blocks.  First pass uses the VMEM-resident
    # K/V path, second pass forces the streamed K/V path (budget = 0).
    for budget in (16 * 1024 * 1024, 0):
        y1, y2 = scm_forward(x1, x2, params, tq=128, tk=128,
                             kv_resident_budget_bytes=budget)
        jax.block_until_ready((y1, y2))

        assert y1.shape == (B, C + ci, H, W) and y2.shape == (B, C + ci, H, W)

        # Precision-matched reference (bf16 MXU operands, f32 accumulation).
        assert jnp.allclose(y1, r1m, atol=1e-2, rtol=1e-2), \
            float(jnp.abs(y1 - r1m).max())
        assert jnp.allclose(y2, r2m, atol=1e-2, rtol=1e-2), \
            float(jnp.abs(y2 - r2m).max())

        # Loose check against the pure-f32 module (bf16 quantization only).
        assert jnp.allclose(y1, r1, atol=0.35, rtol=0.05), \
            float(jnp.abs(y1 - r1).max())
        assert jnp.allclose(y2, r2, atol=0.35, rtol=0.05), \
            float(jnp.abs(y2 - r2).max())

    print("KERNEL_OK")
</pallas_src>

<mosaic_0001>
module attributes {stable_mosaic.version = 11 : i64} {
  func.func @_kv_proj_kernel(%arg0: i32, %arg1: i32, %arg2: memref<1x4x128xbf16, #tpu.memory_space<vmem>>, %arg3: memref<1x4x128xbf16, #tpu.memory_space<vmem>>, %arg4: memref<16x4xbf16, #tpu.memory_space<vmem>>, %arg5: memref<16x4xbf16, #tpu.memory_space<vmem>>, %arg6: memref<16x1xf32, #tpu.memory_space<vmem>>, %arg7: memref<16x1xf32, #tpu.memory_space<vmem>>, %arg8: memref<1x16x128xbf16, #tpu.memory_space<vmem>>, %arg9: memref<1x16x128xbf16, #tpu.memory_space<vmem>>) attributes {dimension_semantics = [#tpu.dimension_semantics<parallel>, #tpu.dimension_semantics<parallel>], iteration_bounds = array<i64: 2, 2>, scalar_prefetch = 0 : i64, scratch_operands = 0 : i64, tpu.core_type = #tpu.core_type<tc>, window_params = [{transform_indices = @transform_0, window_bounds = array<i64: 1, 4, 128>}, {transform_indices = @transform_1, window_bounds = array<i64: 1, 4, 128>}, {pipeline_mode = #tpu.pipeline_mode<synchronous>, transform_indices = @transform_2, window_bounds = array<i64: 16, 4>}, {pipeline_mode = #tpu.pipeline_mode<synchronous>, transform_indices = @transform_3, window_bounds = array<i64: 16, 4>}, {pipeline_mode = #tpu.pipeline_mode<synchronous>, transform_indices = @transform_4, window_bounds = array<i64: 16, 1>}, {pipeline_mode = #tpu.pipeline_mode<synchronous>, transform_indices = @transform_5, window_bounds = array<i64: 16, 1>}, {transform_indices = @transform_6, window_bounds = array<i64: 1, 16, 128>}, {transform_indices = @transform_7, window_bounds = array<i64: 1, 16, 128>}]} {
    %c0 = arith.constant 0 : index
    %c0_0 = arith.constant 0 : index
    %0 = vector.load %arg4[%c0, %c0_0] : memref<16x4xbf16, #tpu.memory_space<vmem>>, vector<16x4xbf16>
    %c0_1 = arith.constant 0 : index
    %c0_2 = arith.constant 0 : index
    %c0_3 = arith.constant 0 : index
    %1 = vector.load %arg2[%c0_1, %c0_2, %c0_3] : memref<1x4x128xbf16, #tpu.memory_space<vmem>>, vector<1x4x128xbf16>
    %2 = vector.shape_cast %1 : vector<1x4x128xbf16> to vector<4x128xbf16>
    %cst = arith.constant dense<0.000000e+00> : vector<16x128xf32>
    %3 = tpu.matmul %0, %2, %cst {dimension_numbers = #tpu.dot_dimension_numbers<[1], [0], [0], [1], [0, 0, 1, 1], [], []>} : vector<16x4xbf16>, vector<4x128xbf16>, vector<16x128xf32> -> vector<16x128xf32>
    %c0_4 = arith.constant 0 : index
    %c0_5 = arith.constant 0 : index
    %4 = vector.load %arg6[%c0_4, %c0_5] : memref<16x1xf32, #tpu.memory_space<vmem>>, vector<16x1xf32>
    %5 = vector.broadcast %4 : vector<16x1xf32> to vector<16x128xf32>
    %6 = arith.addf %3, %5 : vector<16x128xf32>
    %7 = arith.truncf %6 : vector<16x128xf32> to vector<16x128xbf16>
    %c0_6 = arith.constant 0 : index
    %c0_7 = arith.constant 0 : index
    %c0_8 = arith.constant 0 : index
    %8 = vector.load %arg8[%c0_6, %c0_7, %c0_8] : memref<1x16x128xbf16, #tpu.memory_space<vmem>>, vector<1x16x128xbf16>
    %9 = vector.shape_cast %8 : vector<1x16x128xbf16> to vector<16x128xbf16>
    %10 = vector.shape_cast %7 : vector<16x128xbf16> to vector<1x16x128xbf16>
    tpu.vector_store %arg8[%c0_6, %c0_7, %c0_8], %10 {strides = array<i32>} : memref<1x16x128xbf16, #tpu.memory_space<vmem>>, vector<1x16x128xbf16>,
    %c0_9 = arith.constant 0 : index
    %c0_10 = arith.constant 0 : index
    %11 = vector.load %arg5[%c0_9, %c0_10] : memref<16x4xbf16, #tpu.memory_space<vmem>>, vector<16x4xbf16>
    %c0_11 = arith.constant 0 : index
    %c0_12 = arith.constant 0 : index
    %c0_13 = arith.constant 0 : index
    %12 = vector.load %arg3[%c0_11, %c0_12, %c0_13] : memref<1x4x128xbf16, #tpu.memory_space<vmem>>, vector<1x4x128xbf16>
    %13 = vector.shape_cast %12 : vector<1x4x128xbf16> to vector<4x128xbf16>
    %cst_14 = arith.constant dense<0.000000e+00> : vector<16x128xf32>
    %14 = tpu.matmul %11, %13, %cst_14 {dimension_numbers = #tpu.dot_dimension_numbers<[1], [0], [0], [1], [0, 0, 1, 1], [], []>} : vector<16x4xbf16>, vector<4x128xbf16>, vector<16x128xf32> -> vector<16x128xf32>
    %c0_15 = arith.constant 0 : index
    %c0_16 = arith.constant 0 : index
    %15 = vector.load %arg7[%c0_15, %c0_16] : memref<16x1xf32, #tpu.memory_space<vmem>>, vector<16x1xf32>
    %16 = vector.broadcast %15 : vector<16x1xf32> to vector<16x128xf32>
    %17 = arith.addf %14, %16 : vector<16x128xf32>
    %18 = arith.truncf %17 : vector<16x128xf32> to vector<16x128xbf16>
    %c0_17 = arith.constant 0 : index
    %c0_18 = arith.constant 0 : index
    %c0_19 = arith.constant 0 : index
    %19 = vector.load %arg9[%c0_17, %c0_18, %c0_19] : memref<1x16x128xbf16, #tpu.memory_space<vmem>>, vector<1x16x128xbf16>
    %20 = vector.shape_cast %19 : vector<1x16x128xbf16> to vector<16x128xbf16>
    %21 = vector.shape_cast %18 : vector<16x128xbf16> to vector<1x16x128xbf16>
    tpu.vector_store %arg9[%c0_17, %c0_18, %c0_19], %21 {strides = array<i32>} : memref<1x16x128xbf16, #tpu.memory_space<vmem>>, vector<1x16x128xbf16>,
    return
  }
  func.func @transform_0(%arg0: i32, %arg1: i32) -> (i32, i32, i32) {
    %c0_i32 = arith.constant 0 : i32
    %c0_i32_0 = arith.constant 0 : i32
    return %arg0, %c0_i32, %arg1 : i32, i32, i32
  }
  func.func @transform_1(%arg0: i32, %arg1: i32) -> (i32, i32, i32) {
    %c0_i32 = arith.constant 0 : i32
    %c0_i32_0 = arith.constant 0 : i32
    return %arg0, %c0_i32, %arg1 : i32, i32, i32
  }
  func.func @transform_2(%arg0: i32, %arg1: i32) -> (i32, i32) {
    %c0_i32 = arith.constant 0 : i32
    %c0_i32_0 = arith.constant 0 : i32
    %c0_i32_1 = arith.constant 0 : i32
    return %c0_i32, %c0_i32_0 : i32, i32
  }
  func.func @transform_3(%arg0: i32, %arg1: i32) -> (i32, i32) {
    %c0_i32 = arith.constant 0 : i32
    %c0_i32_0 = arith.constant 0 : i32
    %c0_i32_1 = arith.constant 0 : i32
    return %c0_i32, %c0_i32_0 : i32, i32
  }
  func.func @transform_4(%arg0: i32, %arg1: i32) -> (i32, i32) {
    %c0_i32 = arith.constant 0 : i32
    %c0_i32_0 = arith.constant 0 : i32
    %c0_i32_1 = arith.constant 0 : i32
    return %c0_i32, %c0_i32_0 : i32, i32
  }
  func.func @transform_5(%arg0: i32, %arg1: i32) -> (i32, i32) {
    %c0_i32 = arith.constant 0 : i32
    %c0_i32_0 = arith.constant 0 : i32
    %c0_i32_1 = arith.constant 0 : i32
    return %c0_i32, %c0_i32_0 : i32, i32
  }
  func.func @transform_6(%arg0: i32, %arg1: i32) -> (i32, i32, i32) {
    %c2_i32 = arith.constant 2 : i32
    %0 = arith.muli %arg0, %c2_i32 : i32
    %1 = arith.addi %0, %arg1 : i32
    %c0_i32 = arith.constant 0 : i32
    %c0_i32_0 = arith.constant 0 : i32
    %c0_i32_1 = arith.constant 0 : i32
    return %1, %c0_i32, %c0_i32_0 : i32, i32, i32
  }
  func.func @transform_7(%arg0: i32, %arg1: i32) -> (i32, i32, i32) {
    %c2_i32 = arith.constant 2 : i32
    %0 = arith.muli %arg0, %c2_i32 : i32
    %1 = arith.addi %0, %arg1 : i32
    %c0_i32 = arith.constant 0 : i32
    %c0_i32_0 = arith.constant 0 : i32
    %c0_i32_1 = arith.constant 0 : i32
    return %1, %c0_i32, %c0_i32_0 : i32, i32, i32
  }
}

</mosaic_0001>

<bundles_post_ra>
// kernel: tpu_custom_call.1
= control target key start
LH: loop header
LB: loop body
LE: loop exit
PB: predicated region body
PF: predicated region fallthrough
CT: control target
= control target key end

     0   :  { %13 = vsyncpa [#allocation3], 0  ;;  %s1209_s0 = inlined_call_operand.vmem [shape: bf16[2,4,256], index: 0, kind: input, shape index: {}]   ;;  %s1210_s1 = inlined_call_operand.vmem [shape: bf16[2,4,256], index: 1, kind: input, shape index: {}]   ;;  %s1211_s2 = inlined_call_operand.vmem [shape: bf16[16,4], index: 2, kind: input, shape index: {}]   ;;  %s1212_s3 = inlined_call_operand.vmem [shape: bf16[16,4], index: 3, kind: input, shape index: {}]   ;;  %s1213_s4 = inlined_call_operand.vmem [shape: f32[16,1], index: 4, kind: input, shape index: {}]   ;;  %s1214_s5 = inlined_call_operand.vmem [shape: f32[16,1], index: 5, kind: input, shape index: {}]   ;;  %s1215_s6 = inlined_call_operand.hbm [shape: bf16[4,16,128], index: 6, kind: output, shape index: {0}]   ;;  %s1216_s7 = inlined_call_operand.hbm [shape: bf16[4,16,128], index: 7, kind: output, shape index: {1}]  }
   0x1   :  { %15 = vsyncpa [#allocation3 + $0x1], 0 }
   0x2   :  { %16 = vsyncpa [#allocation5], 0 }
   0x3   :  { %18 = vsyncpa [#allocation5 + $0x1], 0  ;;  %s1008_s24 = smov 0   ;;  %s1010_s25 = smov 0  }
   0x4   :  { %s1012_s26 = smov 0   ;;  %s1014_s27 = smov 0  }
   0x5   :  { %s1016_s28 = smov 0   ;;  %s1018_s29 = smov 0  }
   0x6   :  { %s1020_s30 = smov 0   ;;  %s1022_s8 = smov 0  }
   0x7 LB: > { %1221 = sst [smem:[#allocation8_spill]] %s951_s29  ;;  %s683_s9 = sadd.s32 4294967295, %s959_s8   ;;  %s959_s8 = sphi %s1022_s8, %s24_s8   ;;  %s955_s30 = sphi %s1020_s30, %s1230_s30   ;;  %s951_s29 = sphi %s1018_s29, %s1229_s29   ;;  %s947_s28 = sphi %s1016_s28, %s1228_s28   ;;  %s943_s27 = sphi %s1014_s27, %s1227_s27   ;;  %s939_s26 = sphi %s1012_s26, %s1233_s26   ;;  %s935_s25 = sphi %s1010_s25, %s1232_s25   ;;  %s931_s24 = sphi %s1008_s24, %s1231_s24  }
   0x8   : > { %1222 = sst [smem:[#allocation9_spill]] %s955_s30  ;;  %s33_s10 = sadd.s32 1, %s951_s29 }
   0x9   : > { %s36_s11 = sadd.s32 1, %s955_s30  ;;  %p34_p0 = scmp.ge.s32.totalorder %s33_s10, 2 }
   0xa   : > { %s685_s12 = sshll.u32 %s955_s30, 1  ;;  %s684_s13 = sadd.s32 4294967294, %s959_s8  }
   0xb   : > { %s181_s14 = sadd.s32 %s951_s29, %s685_s12  ;;  %s1235_s10 = smov (%p34_p0, %s33_s10), 0 }
   0xc   : > { %1223 = sst [smem:[#allocation10_spill]] %s1235_s10  ;;  %s1237_s11 = smov (!%p34_p0, %s36_s11), %s955_s30 }
   0xd   : > { %p197_p1 = scmp.ne.s32.totalorder %s939_s26, %s935_s25  ;;  %p198_p2 = scmp.eq.s32.totalorder %s683_s9, 3 }
   0xe   : > { %p38_p3 = scmp.ge.s32.totalorder %s1237_s11, 2  ;;  %p203_p4 = scmp.ne.s32.totalorder %s935_s25, %s931_s24 }
   0xf   : > { %p1061_p5 = por %p198_p2, %p197_p1  ;;  %p204_p6 = scmp.eq.s32.totalorder %s684_s13, 3 }
  0x10   : > { %s1239_s11 = smov (%p38_p3, %s1237_s11), 0  ;;  %p691_p8 = scmp.ge.s32.totalorder %s959_s8, 1 }
  0x11   : > { %1225 = sst [smem:[#allocation11_spill]] %s1239_s11  ;;  %p1067_p7 = por %p204_p6, %p203_p4 }
  0x12   : > { %s686_s17 = sshll.u32 %s1239_s11, 1  ;;  %p286_p9 = scmp.lt.s32.totalorder %s959_s8, 5 }
  0x13   : > { %s183_s18 = sadd.s32 %s686_s17, %s1235_s10  ;;  %s187_s19 = sadd.s32 1, %s939_s26 }
  0x14   : > { %s184_s20 = ssub.s32 %s181_s14, %s183_s18  ;;  %p287_p10 = pnand %p691_p8, %p286_p9 }
  0x15   : > { %p185_p11 = scmp.eq.s32.totalorder %s184_s20, 0  ;;  %p334_p12 = scmp.lt.s32.totalorder (!%p287_p10), %s947_s28, 1  ;;  %v961_v0 = vmov (!%p287_p10), 0.0   ;;  %vm962_vm0 = vmmov (!%p287_p10), 0   ;;  %v963_v1 = vmov (!%p287_p10), 0   ;;  %v437_v2 = vld [vmem:[%s1214_s5] sm:$0xff] (!%p287_p10) }
  0x16   : > { %290 = sbr.rel (%p287_p10) target bundleno = 297 (0x129), region = 44  ;;  %p336_p13 = scmp.lt.s32.totalorder (!%p287_p10), %s943_s27, 1  ;;  %736 = vmatprep.subr.bf16.mxu0 (!%p287_p10), %v961_v0  ;;  %742 = vmatprep.subr.bf16.mxu1 (!%p287_p10), %v961_v0  ;;  %v358_v3 = vld [vmem:[%s1213_s4] sm:$0xff] (!%p287_p10)  ;;  %v438_v4 = vld [vmem:[%s1214_s5 + $0x8] sm:$0xff] (!%p287_p10)  ;;  %vm379_vm1 = vcmask (!%p287_p10), 1041408   ;;  %vm375_vm2 = vcmask (!%p287_p10), 31744  }
  0x17   : > { %s1077_s21 = scalar_select %p185_p11, %s939_s26, %s187_s19  }
  0x18   : > { %738 = vmatprep.mubr.msk.bf16.mxu0 (!%p287_p10), %vm962_vm0, %v961_v0  ;;  %744 = vmatprep.mubr.msk.bf16.mxu1 (!%p287_p10), %vm962_vm0, %v961_v0  ;;  %v359_v5 = vld [vmem:[%s1213_s4 + $0x8] sm:$0xff] (!%p287_p10)  ;;  %v831_v10 = vld [vmem:[%s1211_s2] sm:$0xff] (!%p287_p10)  }
  0x19   : > { %830 = vset.pattern.permute.xlu1 (!%p287_p10), %v963_v1  ;;  %829 = vset.pattern.permute.xlu0 (!%p287_p10), %v963_v1  ;;  %v832_v11 = vld [vmem:[%s1212_s3] sm:$0xff] (!%p287_p10)  }
  0x1a   : > { %441 = vperm.xlu1 (!%p287_p10), %830, %v437_v2   ;;  %362 = vperm.xlu0 (!%p287_p10), %829, %v358_v3  }
  0x1d   : > { %s335_s22 = scalar_select %p334_p12, %s947_s28, 1 }
  0x1e   : > { %s337_s23 = scalar_select %p336_p13, %s943_s27, 1  ;;  %446 = vperm.xlu1 %830, %v438_v4   ;;  %367 = vperm.xlu0 %829, %v359_v5  }
  0x1f   : > { %s694_s17 = sshll.u32 %s335_s22, 1 }
  0x20   : > { %s339_s18 = sadd.s32 %s694_s17, %s337_s23 }
  0x21   : > { %s695_s30 = sshll.u32 %s339_s18, 1  ;;  %s708_s18 = sshll.u32 %s947_s28, 1 }
  0x22   : > { %s341_s13 = scalar_lea.vmem %s1209_s0, %s695_s30  ;;  %s349_s29 = scalar_lea.vmem %s1210_s1, %s695_s30 }
  0x23   : > { %v357_v6 = vld [vmem:[%s341_s13] sm:$0x3]  ;;  %s525_s19 = sadd.s32 %s943_s27, %s708_s18  ;;  %s964_s18 = smov [#allocation2]  }
  0x24   : > { %v436_v7 = vld [vmem:[%s349_s29] sm:$0x3]  ;;  %v381_v8 = vsel %vm379_vm1, %v357_v6, 0  ;;  %s1108_s29 = sand.u32 1, %s935_s25   ;;  %s720_s14 = sshll.u32 %s525_s19, 7 }
  0x25   : > { %v458_v9 = vsel %vm379_vm1, %v436_v7, 0  ;;  %737 = vmatpush3.bf16.msra.mxu0 %v381_v8  ;;  %s692_s30 = sshll.u32 %s1108_s29, 3  ;;  %s1120_s22 = scalar_lea.hbm %s1215_s6, %s720_s14 }
  0x26   : > { %743 = vmatpush3.bf16.msra.mxu1 %v458_v9  ;;  %s326_s20 = scalar_lea.vmem [#allocation2], %s692_s30  ;;  %s333_s12 = scalar_lea.vmem [#allocation4], %s692_s30 }
  0x27   : > { %s532_s9 = sshll.u32 %s326_s20, 4  ;;  %s550_s13 = sshll.u32 %s333_s12, 4  ;;  %s1113_s9 = int_to_ptr.vmem [resolvable:$true] %s532_s9  ;;  %s1115_s13 = int_to_ptr.vmem [resolvable:$true] %s550_s13 }
  0x28   : > { %739 = vmatmul.mubr.msk.bf16.vlgmr.msra.gmra.mrb[0].mxu0 %vm375_vm2, %v831_v10  ;;  %s1125_s23 = scalar_lea.hbm %s1216_s7, %s720_s14  ;;  %s512_s17 = scalar_lea.sflag [#allocation3], %s1108_s29 }
  0x29   : > { %745 = vmatmul.mubr.msk.bf16.vlgmr.msra.gmra.mrb[0].mxu1 %vm375_vm2, %v832_v11  ;;  %s833_s30 = scalar_lea.vmem %s1113_s9, 128  ;;  %s837_s19 = sshll.u32 %s964_s18, 4  ;;  %s838_s19 = int_to_ptr.vmem [resolvable:$false] %s837_s19 }
  0x2a   : > { %p834_p0 = scmp.ne.s32.totalorder %s1113_s9, %s833_s30  ;;  %s839_s27 = scalar_lea.vmem %s838_s19, 256 }
  0x2b   : > { %p840_p3 = scmp.lt.s32.totalorder %s1113_s9, %s838_s19  ;;  %p841_p4 = scmp.lt.s32.totalorder %s839_s27, %s833_s30 }
  0x2c   : > { %p835_p1 = pnand %p834_p0, %p1061_p5 }
  0x2d   : > { %p842_p6 = por %p841_p4, %p840_p3 }
  0x2e   : > { %p836_p2 = pneg %p835_p1 }
  0x30   : > { %p843_p8 = pnand %p842_p6, %p836_p2 }
  0x99   : > { %v442_v12 = vpop.permute.xlu1 %441  ;;  %v363_v13 = vpop.permute.xlu0 %362 }
  0x9d   : > { %v447_v14 = vpop.permute.xlu1 %446  ;;  %v368_v15 = vpop.permute.xlu0 %367 }
  0xfb   : > { %v417_v16 = vpop.f32.mrb[0].mxu0 }
  0xfc   : > { %v494_v17 = vpop.f32.mrb[0].mxu1  ;;  %v740_v18 = vpop.f32.mrb[1].mxu0  ;;  %v418_v22 = vadd.f32 %v417_v16, %v363_v13 }
  0xfd   : > { %v746_v19 = vpop.f32.mrb[1].mxu1  ;;  %v420_v20 = vpop.f32.mrb[2].mxu0  ;;  %v495_v23 = vadd.f32 %v494_v17, %v442_v12 }
  0xfe   : > { %v497_v21 = vpop.f32.mrb[2].mxu1  ;;  %v421_v24 = vadd.f32 %v420_v20, %v368_v15  ;;  %v741_v26 = vpop.f32.mrb[3].mxu0 }
  0xff   : > { %v498_v25 = vadd.f32 %v497_v21, %v447_v14  ;;  %v747_v27 = vpop.f32.mrb[3].mxu1 }
 0x100   : > { %v725_v28 = vpack.c.bf16 %v421_v24, %v418_v22 }
 0x101   : > { %v730_v29 = vpack.c.bf16 %v498_v25, %v495_v23 }
 0x102   : > { %726 = vst [vmem:[%s326_s20] sm:$0xff] %v725_v28  }
 0x103   : > { %731 = vst [vmem:[%s333_s12] sm:$0xff] %v730_v29  }
 0x104   : > { %846 = shalt.err (!%p843_p8)
}
 0x105   : > { %s847_s20 = scalar_lea.hbm %s1120_s22, 128  ;;  %s851_s28 = scalar_lea.hbm %s1215_s6, 512 }
 0x106   : > { %p848_p9 = scmp.ne.s32.totalorder %s1120_s22, %s847_s20  ;;  %p852_p12 = scmp.lt.u32.totalorder %s1120_s22, %s1215_s6 }
 0x107   : > { %p853_p13 = scmp.lt.u32.totalorder %s851_s28, %s847_s20  ;;  %p855_p1 = scmp.lt.u32.totalorder %s847_s20, %s1120_s22 }
 0x108   : > { %p849_p10 = pnand %p848_p9, %p1061_p5 }
 0x109   : > { %p854_p0 = por %p853_p13, %p852_p12 }
 0x10a   : > { %p850_p11 = pneg %p849_p10 }
 0x10b   : > { %p856_p2 = por %p855_p1, %p854_p0 }
 0x10d   : > { %p857_p3 = pnand %p856_p2, %p850_p11 }
 0x10f   : > { %860 = shalt.err (!%p857_p3)
}
 0x110   : > { %s965_s30 = smov 64   ;;  %s966_s18 = smov 4  }
 0x111   : > { %748 = dma.vmem_to_hbm [thread:$0]  (%p1061_p5), %s1113_s9, 128, %s1120_s22, %s512_s17, %s965_s30, %s965_s30, %s966_s18  }
 0x112   : > { %s517_s19 = scalar_lea.sflag [#allocation5], %s1108_s29  ;;  %s861_s27 = scalar_lea.vmem %s1115_s13, 128 }
 0x113   : > { %p862_p4 = scmp.ne.s32.totalorder %s1115_s13, %s861_s27  ;;  %s967_s20 = smov [#allocation4]  }
 0x114   : > { %s865_s12 = sshll.u32 %s967_s20, 4  ;;  %s866_s12 = int_to_ptr.vmem [resolvable:$false] %s865_s12 }
 0x115   : > { %p863_p6 = pnand %p862_p4, %p1061_p5  ;;  %s867_s14 = scalar_lea.vmem %s866_s12, 256 }
 0x116   : > { %p868_p9 = scmp.lt.s32.totalorder %s1115_s13, %s866_s12  ;;  %p869_p10 = scmp.lt.s32.totalorder %s867_s14, %s861_s27 }
 0x117   : > { %p864_p8 = pneg %p863_p6 }
 0x118   : > { %p870_p11 = por %p869_p10, %p868_p9 }
 0x11a   : > { %p871_p12 = pnand %p870_p11, %p864_p8 }
 0x11c   : > { %874 = shalt.err (!%p871_p12)
}
 0x11d   : > { %s875_s9 = scalar_lea.hbm %s1125_s23, 128  ;;  %s879_s28 = scalar_lea.hbm %s1216_s7, 512 }
 0x11e   : > { %p876_p13 = scmp.ne.s32.totalorder %s1125_s23, %s875_s9  ;;  %p880_p2 = scmp.lt.u32.totalorder %s1125_s23, %s1216_s7 }
 0x11f   : > { %p881_p3 = scmp.lt.u32.totalorder %s879_s28, %s875_s9  ;;  %p883_p6 = scmp.lt.u32.totalorder %s875_s9, %s1125_s23 }
 0x120   : > { %p877_p0 = pnand %p876_p13, %p1061_p5 }
 0x121   : > { %p882_p4 = por %p881_p3, %p880_p2 }
 0x122   : > { %p878_p1 = pneg %p877_p0 }
 0x123   : > { %p884_p8 = por %p883_p6, %p882_p4 }
 0x125   : > { %p885_p9 = pnand %p884_p8, %p878_p1 }
 0x127   : > { %888 = shalt.err (!%p885_p9)
}
 0x128   : > { %749 = dma.vmem_to_hbm [thread:$0]  (%p1061_p5), %s1115_s13, 128, %s1125_s23, %s517_s19, %s965_s30, %s965_s30, %s966_s18  }
 0x129 PF: > { %p759_p10 = scmp.ge.s32.totalorder %s959_s8, 2  ;;  %s565_s27 = sand.u32 1, %s931_s24  }
 0x12a   : > { %s566_s20 = scalar_lea.sflag [#allocation3], %s565_s27 }
 0x12b   : > { %p753_p11 = pnand %p759_p10, %p1067_p7 }
 0x12d   : > { %922 = dma.done.wait (!%p753_p11), %s566_s20, 128  }
 0x12e   : > { %924 = vsyncadd (!%p753_p11), %s566_s20, 4294967168  ;;  %s575_s15 = scalar_lea.sflag [#allocation5], %s565_s27 }
 0x12f   : > { %926 = dma.done.wait (!%p753_p11), %s575_s15, 128  }
 0x130   : > { %928 = vsyncadd (!%p753_p11), %s575_s15, 4294967168  ;;  %s24_s8 = sadd.s32 1, %s959_s8   ;;  %s1227_s27 = sld [smem:[#allocation8_spill]] }
 0x131   : > { %p21_p12 = scmp.ge.s32.totalorder %s24_s8, 6   ;;  %s1228_s28 = sld [smem:[#allocation9_spill]] }
 0x132   : > { %s1229_s29 = sld [smem:[#allocation10_spill]]  ;;  %s1230_s30 = sld [smem:[#allocation11_spill]] }
 0x133   : > { %s1231_s24 = smov %s935_s25  ;;  %s1232_s25 = smov %s939_s26 }
 0x134   : > { %s1233_s26 = smov %s1077_s21  ;;  %23 = sbr.rel (!%p21_p12) target bundleno = 7 (0x7), region = 99 }
 0x13b   :  { %580 = vsyncpa [#allocation3], 1 }
 0x13c   :  { %582 = vsyncpa [#allocation3 + $0x1], 1 }
 0x13d   :  { %583 = vsyncpa [#allocation5], 1 }
 0x13e   :  { %585 = vsyncpa [#allocation5 + $0x1], 1 }

</bundles_post_ra>
